<compile_context>
chip_gen: v6e
topology: v6e:2x2x1
jax: 0.10.0
libtpu: 0.0.40
codegen_flags: <defaults>
</compile_context>

<pallas_src>
import functools

import jax
import jax.numpy as jnp
from jax.experimental import pallas as pl
from jax.experimental.pallas import tpu as pltpu


def _conv_relu_kernel(p_ref, w_ref, b_ref, o_ref, *, nb, hw):
    """Single wide matmul + bias + ReLU on lane-dense im2col patches.

    p_ref: (K, nb*hw)     im2col patches for this block of nb images;
                          lanes ordered (image, h, w); K = Cin*ks*ks.
    w_ref: (Cout, K)      folded conv weight (OIHW.reshape(Cout, K)).
    b_ref: (Cout, 1)      bias (broadcasts over lanes once).
    o_ref: (nb, Cout, hw) lane-dense NCHW-flattened output block.
    """
    # One MXU matmul for the whole block of images, f32 accumulation.
    acc = jnp.dot(w_ref[...], p_ref[...], preferred_element_type=jnp.float32)
    acc = jnp.maximum(acc + b_ref[...], 0.0).astype(o_ref.dtype)
    # Per-image stores: 128-aligned, 128-multiple lane slices (whole vregs),
    # each an unmasked vst; nb is tiny (<= 4) so the static unroll is cheap.
    for b in range(nb):
        o_ref[b] = acc[:, b * hw:(b + 1) * hw]


def _tensorcores_per_chip():
    """How many TensorCores share one chip (drives nb / grid shaping)."""
    try:
        info = pltpu.get_tpu_info()
        for attr in ("tensorcores_per_chip", "num_tensorcores",
                     "num_cores", "cores_per_chip"):
            val = getattr(info, attr, None)
            if val:
                return int(val)
    except Exception:
        pass
    try:
        return max(1, int(getattr(jax.devices()[0], "num_cores", 1)))
    except Exception:
        return 1


def simple_conv_forward(x_nchw, weight_oihw, bias, *, ks=3, stride=1, pad=1):
    """SimpleConv forward: reflect-pad conv2d + bias + ReLU (stride=1).

    x_nchw:      (N, Cin, H, W)      float32   (PyTorch layout)
    weight_oihw: (Cout, Cin, ks, ks) float32   (PyTorch Conv2d weight layout)
    bias:        (Cout,)             float32
    returns      (N, Cout, H', W')   float32   (PyTorch layout)
    """
    assert stride == 1, "this kernel implements the module's default stride=1"
    N, Cin, H, W = x_nchw.shape
    Cout = weight_oihw.shape[0]

    # Reflect padding in NCHW (matches PyTorch padding_mode='reflect').
    xp = jnp.pad(x_nchw, ((0, 0), (0, 0), (pad, pad), (pad, pad)),
                 mode="reflect")
    Hp, Wp = xp.shape[2], xp.shape[3]
    Hout = Hp - ks + 1
    Wout = Wp - ks + 1
    HW = Hout * Wout
    K = Cin * ks * ks

    # im2col hoisted to the wrapper (XLA): lane-dense patch matrix (K, N*HW).
    # K ordered (ci, kh, kw) so it matches weight.reshape(Cout, K); lanes
    # ordered (n, h, w) so the kernel can slice per-image blocks for free.
    # TODO(synk): for realistic image sizes, tile H (with a (ks-1)-row halo
    # DMA + in-kernel reflect pad) instead of materializing the padded image
    # and the patch matrix in HBM; size the tile against v7x's 64 MiB VMEM
    # (inputs are double-buffered) and set vmem_limit_bytes explicitly.
    taps = []
    for kh in range(ks):
        for kw in range(ks):
            taps.append(xp[:, :, kh:kh + Hout, kw:kw + Wout])  # (N,Cin,H,W)
    p = jnp.stack(taps, axis=2)                   # (N, Cin, ks*ks, Hout, Wout)
    p = jnp.transpose(p, (1, 2, 0, 3, 4))         # (Cin, ks*ks, N, Hout, Wout)
    patches = p.reshape(K, N * HW)                # (K, N*HW) lane-dense

    w2d = weight_oihw.reshape(Cout, K)            # (Cout, K)
    b2d = bias.reshape(Cout, 1)                   # (Cout, 1)

    # Grid shaping: nb images per grid step.
    n_tc = _tensorcores_per_chip()
    if n_tc <= 1:
        # Single-TC chips (v5e/v6e): cap nb so the static unroll stays small
        # and BlockSpec keeps an input/output pipeline when N grows.
        nb = min(N, 4)
    else:
        # Multi-TC chips (v7x): one grid step per TensorCore.
        nb = pl.cdiv(N, n_tc)
    num_blocks = pl.cdiv(N, nb)
    N_pad = num_blocks * nb
    if N_pad != N:
        # Guard the tail: zero patches -> padded images are sliced off below.
        patches = jnp.pad(patches, ((0, 0), (0, (N_pad - N) * HW)))

    kernel = functools.partial(_conv_relu_kernel, nb=nb, hw=HW)

    out = pl.pallas_call(
        kernel,
        out_shape=jax.ShapeDtypeStruct((N_pad, Cout, HW), jnp.float32),
        grid_spec=pltpu.PrefetchScalarGridSpec(
            num_scalar_prefetch=0,
            grid=(num_blocks,),
            in_specs=[
                # Patch block for this group of nb images (lane-dense).
                pl.BlockSpec((K, nb * HW), lambda i: (0, i)),
                # Weight / bias are constant across the grid.
                pl.BlockSpec((Cout, K), lambda i: (0, 0)),
                pl.BlockSpec((Cout, 1), lambda i: (0, 0)),
            ],
            out_specs=pl.BlockSpec((nb, Cout, HW), lambda i: (i, 0, 0)),
        ),
        compiler_params=pltpu.CompilerParams(
            dimension_semantics=("parallel",)),
    )(patches, w2d, b2d)

    # Drop tail padding; reshape back to PyTorch NCHW layout (free, no transpose).
    return out[:N].reshape(N, Cout, Hout, Wout)


if __name__ == "__main__":
    # SimpleConv(in_ch=4, out_ch=8, ks=3, stride=1, pad=1, pad_mode='reflect',
    #            bias=True, act=ReLU)
    N, Cin, H, W = 2, 4, 16, 16
    Cout, KS = 8, 3

    key = jax.random.PRNGKey(0)
    kx, kw, kb = jax.random.split(key, 3)

    x = jax.random.normal(kx, (N, Cin, H, W), dtype=jnp.float32)
    # Deterministic parameter init (Kaiming-uniform-ish bound like PyTorch).
    fan_in = Cin * KS * KS
    bound = 1.0 / (fan_in ** 0.5)
    weight = jax.random.uniform(kw, (Cout, Cin, KS, KS),
                                minval=-bound, maxval=bound, dtype=jnp.float32)
    bias = jax.random.uniform(kb, (Cout,), minval=-bound, maxval=bound,
                              dtype=jnp.float32)

    out = simple_conv_forward(x, weight, bias, ks=KS, stride=1, pad=1)
    out = jax.block_until_ready(out)

    # Reference: reflect pad + conv + bias + ReLU in plain JAX (NCHW throughout).
    xp_ref = jnp.pad(x, ((0, 0), (0, 0), (1, 1), (1, 1)), mode="reflect")
    ref = jax.lax.conv_general_dilated(
        xp_ref, weight, window_strides=(1, 1), padding="VALID",
        dimension_numbers=("NCHW", "OIHW", "NCHW"))
    ref = jnp.maximum(ref + bias[None, :, None, None], 0.0)

    assert out.shape == (N, Cout, H, W)
    assert jnp.allclose(out, ref, atol=1e-4, rtol=1e-4)

    print("KERNEL_OK")
</pallas_src>

<mosaic_0001>
module attributes {stable_mosaic.version = 11 : i64} {
  func.func @_conv_relu_kernel(%arg0: i32, %arg1: memref<36x512xf32, #tpu.memory_space<vmem>>, %arg2: memref<8x36xf32, #tpu.memory_space<vmem>>, %arg3: memref<8x1xf32, #tpu.memory_space<vmem>>, %arg4: memref<2x8x256xf32, #tpu.memory_space<vmem>>) attributes {dimension_semantics = [#tpu.dimension_semantics<parallel>], iteration_bounds = array<i64: 1>, scalar_prefetch = 0 : i64, scratch_operands = 0 : i64, tpu.core_type = #tpu.core_type<tc>, window_params = [{transform_indices = @transform_0, window_bounds = array<i64: 36, 512>}, {pipeline_mode = #tpu.pipeline_mode<synchronous>, transform_indices = @transform_1, window_bounds = array<i64: 8, 36>}, {pipeline_mode = #tpu.pipeline_mode<synchronous>, transform_indices = @transform_2, window_bounds = array<i64: 8, 1>}, {transform_indices = @transform_3, window_bounds = array<i64: 2, 8, 256>}]} {
    %c0 = arith.constant 0 : index
    %c0_0 = arith.constant 0 : index
    %0 = vector.load %arg2[%c0, %c0_0] : memref<8x36xf32, #tpu.memory_space<vmem>>, vector<8x36xf32>
    %c0_1 = arith.constant 0 : index
    %c0_2 = arith.constant 0 : index
    %1 = vector.load %arg1[%c0_1, %c0_2] : memref<36x512xf32, #tpu.memory_space<vmem>>, vector<36x512xf32>
    %cst = arith.constant dense<0.000000e+00> : vector<8x512xf32>
    %2 = tpu.matmul %0, %1, %cst {dimension_numbers = #tpu.dot_dimension_numbers<[1], [0], [0], [1], [0, 0, 1, 1], [], []>} : vector<8x36xf32>, vector<36x512xf32>, vector<8x512xf32> -> vector<8x512xf32>
    %c0_3 = arith.constant 0 : index
    %c0_4 = arith.constant 0 : index
    %3 = vector.load %arg3[%c0_3, %c0_4] : memref<8x1xf32, #tpu.memory_space<vmem>>, vector<8x1xf32>
    %4 = vector.broadcast %3 : vector<8x1xf32> to vector<8x512xf32>
    %5 = arith.addf %2, %4 : vector<8x512xf32>
    %cst_5 = arith.constant 0.000000e+00 : f32
    %6 = vector.broadcast %cst_5 : f32 to vector<8x512xf32>
    %7 = arith.maximumf %5, %6 : vector<8x512xf32>
    %8 = vector.extract_strided_slice %7 {offsets = [0, 0], sizes = [8, 256], strides = [1, 1]} : vector<8x512xf32> to vector<8x256xf32>
    %c0_6 = arith.constant 0 : index
    %c0_7 = arith.constant 0 : index
    %c0_8 = arith.constant 0 : index
    %9 = vector.load %arg4[%c0_6, %c0_7, %c0_8] : memref<2x8x256xf32, #tpu.memory_space<vmem>>, vector<1x8x256xf32>
    %10 = vector.shape_cast %9 : vector<1x8x256xf32> to vector<8x256xf32>
    %11 = vector.shape_cast %8 : vector<8x256xf32> to vector<1x8x256xf32>
    tpu.vector_store %arg4[%c0_6, %c0_7, %c0_8], %11 {strides = array<i32>} : memref<2x8x256xf32, #tpu.memory_space<vmem>>, vector<1x8x256xf32>,
    %12 = vector.extract_strided_slice %7 {offsets = [0, 256], sizes = [8, 256], strides = [1, 1]} : vector<8x512xf32> to vector<8x256xf32>
    %c1 = arith.constant 1 : index
    %c0_9 = arith.constant 0 : index
    %c0_10 = arith.constant 0 : index
    %13 = vector.load %arg4[%c1, %c0_9, %c0_10] : memref<2x8x256xf32, #tpu.memory_space<vmem>>, vector<1x8x256xf32>
    %14 = vector.shape_cast %13 : vector<1x8x256xf32> to vector<8x256xf32>
    %15 = vector.shape_cast %12 : vector<8x256xf32> to vector<1x8x256xf32>
    tpu.vector_store %arg4[%c1, %c0_9, %c0_10], %15 {strides = array<i32>} : memref<2x8x256xf32, #tpu.memory_space<vmem>>, vector<1x8x256xf32>,
    return
  }
  func.func @transform_0(%arg0: i32) -> (i32, i32) {
    %c0_i32 = arith.constant 0 : i32
    %c0_i32_0 = arith.constant 0 : i32
    return %c0_i32, %arg0 : i32, i32
  }
  func.func @transform_1(%arg0: i32) -> (i32, i32) {
    %c0_i32 = arith.constant 0 : i32
    %c0_i32_0 = arith.constant 0 : i32
    %c0_i32_1 = arith.constant 0 : i32
    return %c0_i32, %c0_i32_0 : i32, i32
  }
  func.func @transform_2(%arg0: i32) -> (i32, i32) {
    %c0_i32 = arith.constant 0 : i32
    %c0_i32_0 = arith.constant 0 : i32
    %c0_i32_1 = arith.constant 0 : i32
    return %c0_i32, %c0_i32_0 : i32, i32
  }
  func.func @transform_3(%arg0: i32) -> (i32, i32, i32) {
    %c0_i32 = arith.constant 0 : i32
    %c0_i32_0 = arith.constant 0 : i32
    %c0_i32_1 = arith.constant 0 : i32
    return %arg0, %c0_i32, %c0_i32_0 : i32, i32, i32
  }
}

</mosaic_0001>

<bundles_post_ra>
// kernel: tpu_custom_call.1
= control target key start
LH: loop header
LB: loop body
LE: loop exit
PB: predicated region body
PF: predicated region fallthrough
CT: control target
= control target key end

     0   :  { %8 = vsyncpa [#allocation3], 0  ;;  %s340_s0 = inlined_call_operand.hbm [shape: f32[36,512], index: 0, kind: input, shape index: {}]   ;;  %s341_s1 = inlined_call_operand.vmem [shape: f32[8,36], index: 1, kind: input, shape index: {}]   ;;  %s342_s2 = inlined_call_operand.vmem [shape: f32[8,1], index: 2, kind: input, shape index: {}]   ;;  %s343_s3 = inlined_call_operand.hbm [shape: f32[2,8,256], index: 3, kind: output, shape index: {}]  }
   0x1   :  { %9 = vsyncpa [#allocation4], 0  ;;  %s300_s12 = smov [#allocation2]  }
   0x2   :  { %s15_s13 = sshll.u32 %s300_s12, 4  ;;  %s16_s13 = int_to_ptr.vmem [resolvable:$true] %s15_s13 }
   0x3   :  { %s264_s14 = scalar_lea.vmem %s16_s13, 2560  ;;  %p269_p1 = scmp.lt.s32.totalorder %s16_s13, %s16_s13 }
   0x4   :  { %p265_p0 = scmp.ne.s32.totalorder %s16_s13, %s264_s14  ;;  %p270_p2 = scmp.lt.s32.totalorder %s264_s14, %s264_s14 }
   0x6   :  { %p271_p3 = por %p270_p2, %p269_p1 }
   0x8   :  { %p272_p4 = pnand %p271_p3, %p265_p0 }
   0xa   :  { %275 = shalt.err (!%p272_p4)
}
   0xb   :  { %s301_s15 = smov 512   ;;  %s302_s16 = smov 32  }
   0xc   :  { %21 = dma.hbm_to_vmem [thread:$0]  %s340_s0, 2560, %s16_s13, [#allocation3], %s301_s15, %s301_s15, %s302_s16  }
   0xd   :  { %296 = dma.done.wait [#allocation3], 2560  }
   0xe   :  { %297 = vsyncadd [#allocation3], 4294964736  ;;  %v303_v0 = vmov 0.0   ;;  %v304_v1 = vmov 0   ;;  %vm60_vm0 = vcmask 1043456   ;;  %v43_v6 = vld [vmem:[#allocation2 + $0x68] sm:$0xff] }
   0xf   :  { %137 = vmatprep.mubr.f32.mxu0 %v303_v0  ;;  %208 = vmatprep.mubr.f32.mxu1 %v303_v0  ;;  %v47_v2 = vld [vmem:[#allocation2 + $0x88] sm:$0xf]  ;;  %v49_v3 = vld [vmem:[#allocation2 + $0x98] sm:$0xf]  ;;  %v46_v4 = vld [vmem:[#allocation2 + $0x80] sm:$0xf] }
  0x10   :  { %255 = vset.pattern.permute.xlu0 %v304_v1  ;;  %241 = vmatprep.subr.msk.mxu0 %vm60_vm0, %v47_v2  ;;  %v48_v5 = vld [vmem:[#allocation2 + $0x90] sm:$0xf]  ;;  %v45_v7 = vld [vmem:[#allocation2 + $0x78] sm:$0xff]  ;;  %v42_v8 = vld [vmem:[#allocation2 + $0x60] sm:$0xff]  ;;  %vm56_vm1 = vcmask 293888   ;;  %s305_s22 = smov [#allocation5]  }
  0x11   :  { %244 = vmatprep.subr.msk.mxu1 %vm60_vm0, %v49_v3  ;;  %242 = vmatpush1.msk.msra.mxu0 %vm60_vm0, %v46_v4  ;;  %v44_v9 = vld [vmem:[#allocation2 + $0x70] sm:$0xff]  ;;  %v39_v10 = vld [vmem:[#allocation2 + $0x48] sm:$0xff]  ;;  %v41_v11 = vld [vmem:[#allocation2 + $0x58] sm:$0xff]  ;;  %s229_s23 = sshll.u32 %s305_s22, 4  ;;  %s230_s23 = int_to_ptr.vmem [resolvable:$true] %s229_s23 }
  0x12   :  { %245 = vmatpush1.msk.msra.mxu1 %vm60_vm0, %v48_v5  ;;  %97 = vmatprep.subr.mxu0 %v43_v6  ;;  %v38_v12 = vld [vmem:[#allocation2 + $0x40] sm:$0xff]  ;;  %v40_v13 = vld [vmem:[#allocation2 + $0x50] sm:$0xff]  ;;  %v35_v14 = vld [vmem:[#allocation2 + $0x28] sm:$0xff]  ;;  %p281_p6 = scmp.lt.s32.totalorder %s230_s23, %s230_s23 }
  0x13   :  { %168 = vmatprep.subr.mxu1 %v45_v7  ;;  %98 = vmatpush1.msra.mxu0 %v42_v8  ;;  %v37_v15 = vld [vmem:[#allocation2 + $0x38] sm:$0xff]  ;;  %v34_v16 = vld [vmem:[#allocation2 + $0x20] sm:$0xff]  ;;  %v36_v17 = vld [vmem:[#allocation2 + $0x30] sm:$0xff] }
  0x14   :  { %169 = vmatpush1.msra.mxu1 %v44_v9  ;;  %99 = vmatprep.subr.mxu0 %v39_v10  ;;  %v31_v18 = vld [vmem:[#allocation2 + $0x8] sm:$0xff]  ;;  %v33_v19 = vld [vmem:[#allocation2 + $0x18] sm:$0xff]  ;;  %v30_v20 = vld [vmem:[#allocation2] sm:$0xff] }
  0x15   :  { %170 = vmatprep.subr.mxu1 %v41_v11  ;;  %100 = vmatpush1.msra.mxu0 %v38_v12  ;;  %v32_v21 = vld [vmem:[#allocation2 + $0x10] sm:$0xff]  ;;  %v29_v22 = vld [vmem:[%s341_s1] sm:$0xff]  ;;  %s276_s1 = scalar_lea.vmem %s230_s23, 512 }
  0x16   :  { %171 = vmatpush1.msra.mxu1 %v40_v13  ;;  %101 = vmatprep.subr.mxu0 %v35_v14  ;;  %v50_v23 = vld [vmem:[%s342_s2] sm:$0xff]  ;;  %p277_p5 = scmp.ne.s32.totalorder %s230_s23, %s276_s1  ;;  %p282_p7 = scmp.lt.s32.totalorder %s276_s1, %s276_s1 }
  0x17   :  { %172 = vmatprep.subr.mxu1 %v37_v15  ;;  %102 = vmatpush1.msra.mxu0 %v34_v16 }
  0x18   :  { %173 = vmatpush1.msra.mxu1 %v36_v17  ;;  %103 = vmatprep.subr.mxu0 %v31_v18  ;;  %p283_p8 = por %p282_p7, %p281_p6 }
  0x19   :  { %174 = vmatprep.subr.mxu1 %v33_v19  ;;  %104 = vmatpush1.msra.mxu0 %v30_v20 }
  0x1a   :  { %175 = vmatpush1.msra.mxu1 %v32_v21  ;;  %243 = vmatmul.mubr.msk.f32.vlgmr.msra.gmra.mxu0 %vm56_vm1, %v29_v22  ;;  %p284_p9 = pnand %p283_p8, %p277_p5 }
  0x1b   :  { %246 = vmatmul.mubr.msk.f32.vlgmr.msra.gmra.mxu1 %vm56_vm1, %v29_v22  ;;  %53 = vperm.xlu0 %255, %v50_v23  }
  0x96   :  { %v54_v24 = vpop.permute.xlu0 %53 }
  0xda   :  { %v139_v25 = vpop.f32.mrf.mxu0 }
  0xdb   :  { %v210_v26 = vpop.f32.mrf.mxu1  ;;  %v140_v27 = vadd.f32 %v139_v25, %v54_v24 }
  0xdc   :  { %v211_v28 = vadd.f32 %v210_v26, %v54_v24  ;;  %v141_v29 = vpop.f32.mrf.mxu0 }
  0xdd   :  { %v212_v30 = vpop.f32.mrf.mxu1  ;;  %v215_v31 = vmax.f32 %v140_v27, 0.0  ;;  %v142_v33 = vadd.f32 %v141_v29, %v54_v24 }
  0xde   :  { %v217_v32 = vmax.f32 %v211_v28, 0.0  ;;  %v213_v34 = vadd.f32 %v212_v30, %v54_v24 }
  0xdf   :  { %219 = vst [vmem:[#allocation5] sm:$0xff] %v215_v31  ;;  %v216_v35 = vmax.f32 %v142_v33, 0.0 }
  0xe0   :  { %222 = vst [vmem:[#allocation5 + $0x10] sm:$0xff] %v217_v32  ;;  %v218_v36 = vmax.f32 %v213_v34, 0.0 }
  0xe1   :  { %220 = vst [vmem:[#allocation5 + $0x8] sm:$0xff] %v216_v35 }
  0xe2   :  { %223 = vst [vmem:[#allocation5 + $0x18] sm:$0xff] %v218_v36 }
  0xe3   :  { %287 = shalt.err (!%p284_p9)
}
  0xe4   :  { %s306_s2 = smov 256   ;;  %s307_s24 = smov 16  }
  0xe5   :  { %235 = dma.vmem_to_hbm [thread:$0]  %s230_s23, 512, %s343_s3, [#allocation4], %s306_s2, %s306_s2, %s307_s24  }
  0xe6   :  { %298 = dma.done.wait [#allocation4], 512  }
  0xe7   :  { %299 = vsyncadd [#allocation4], 4294966784 }
  0xe8   :  { %239 = vsyncpa [#allocation3], 1 }
  0xe9   :  { %240 = vsyncpa [#allocation4], 1 }

</bundles_post_ra>
